<compile_context>
chip_gen: v7x
topology: tpu7x:2x2x1
jax: 0.10.0
libtpu: 0.0.40
codegen_flags: <defaults>
</compile_context>

<pallas_src>
import math

import jax
import jax.numpy as jnp
from jax.experimental import pallas as pl
from jax.experimental.pallas import tpu as pltpu

EPS = 1e-5  # nn.InstanceNorm1d default eps (affine=False, no running stats)


def _round_up(x, m):
    return ((x + m - 1) // m) * m


def _vmem_capacity_bytes():
    try:
        info = pltpu.get_tpu_info()
        cap = getattr(info, "vmem_capacity_bytes", None)
        if cap:
            return int(cap)
    except Exception:
        pass
    return 64 << 20  # conservative default: v7x per-TensorCore VMEM


def _estimate_vmem(Cin, K, Lp_total, Lpad, tc, cout_pad, op_bytes, out_bytes,
                   resident):
    est = 2 * Cin * Lp_total * op_bytes                   # x block, double-buffered
    est += K * Cin * Lpad * op_bytes                      # im2col scratch
    if resident:
        est += 2 * (2 * cout_pad) * K * Cin * op_bytes    # whole fused weights
    else:
        est += 2 * (2 * tc) * K * Cin * op_bytes          # per-tile weights, x2 bufs
    est += 2 * tc * Lpad * out_bytes                      # output block, x2 bufs
    est += 3 * (2 * tc) * Lpad * 4                        # f32 acc + epilogue temps
    return est


def _pick_tiling(Cout, Cin, K, Lp_total, Lpad, op_bytes, out_bytes, budget):
    """VMEM-aware Cout tile picker. Returns (tc, Cout_pad, weights_resident, est)."""
    cout8 = _round_up(Cout, 8)
    cands = sorted({c for c in (512, 256, 128, 64, 32, 16, 8) if c <= cout8}
                   | {cout8}, reverse=True)
    for tc in cands:
        cout_pad = _round_up(Cout, tc)
        wf_bytes = 2 * cout_pad * K * Cin * op_bytes
        resident = wf_bytes <= budget // 4
        est = _estimate_vmem(Cin, K, Lp_total, Lpad, tc, cout_pad, op_bytes,
                             out_bytes, resident)
        if est <= budget:
            return tc, cout_pad, resident, est
    # TODO(synk): add an L-tiling path (chunked stats, second normalize pass
    # via pltpu.emit_pipeline) for very long sequences instead of only
    # shrinking the channel tile.
    tc = cands[-1]
    cout_pad = _round_up(Cout, tc)
    est = _estimate_vmem(Cin, K, Lp_total, Lpad, tc, cout_pad, op_bytes,
                         out_bytes, False)
    return tc, cout_pad, False, est


def _make_kernel(K, Cin, Lout, tc, weights_resident):
    def kernel(x_ref, wf_ref, o_ref, xcol_ref):
        # x_ref   : (1, Cin, Lpad + K - 1)  zero-padded input, one batch element
        # wf_ref  : (2*Cout_pad, K*Cin) if resident else (2*tc, K*Cin)
        # o_ref   : (1, tc, Lpad)           gated output tile (lane-dense)
        # xcol_ref: (K*Cin, Lpad)           im2col scratch, persists across j
        j = pl.program_id(1)
        Lpad = o_ref.shape[2]

        # ---- im2col slab, built once per batch element (j == 0, inner axis).
        @pl.when(j == 0)
        def _():
            x = x_ref[0]  # (Cin, Lpad + K - 1)
            for k in range(K):
                xcol_ref[k * Cin:(k + 1) * Cin, :] = x[:, k:k + Lpad]

        # ---- this tile's fused weights: rows [0:tc]=conv1, [tc:2tc]=conv2.
        if weights_resident:
            row0 = pl.multiple_of(j * (2 * tc), 2 * tc)
            w = wf_ref[pl.ds(row0, 2 * tc), :]
        else:
            w = wf_ref[...]

        # ---- both convolutions as ONE matmul (K folded into contraction).
        acc = jnp.dot(w, xcol_ref[...], preferred_element_type=jnp.float32)
        y1 = acc[:tc, :]   # conv1 pre-norm  (tc, Lpad)
        y2 = acc[tc:, :]   # conv2 pre-norm  (tc, Lpad)

        # ---- InstanceNorm1d(affine=False): per-channel stats over the true
        #      length only (padded lanes masked), two-pass variance.
        if Lpad == Lout:
            mask = None
        else:
            lane = jax.lax.broadcasted_iota(jnp.int32, (1, Lpad), 1)
            mask = (lane < Lout).astype(jnp.float32)
        inv_l = 1.0 / Lout

        def inorm(y):
            ym = y if mask is None else y * mask
            mean = jnp.sum(ym, axis=1, keepdims=True) * inv_l
            d = y - mean
            dm = d if mask is None else d * mask
            var = jnp.sum(dm * dm, axis=1, keepdims=True) * inv_l
            return d * jax.lax.rsqrt(var + EPS)

        o_ref[0] = (inorm(y1) * jax.nn.sigmoid(inorm(y2))).astype(o_ref.dtype)

    return kernel


def gated_conv1d(x_ncl, w1, b1, w2, b2, *, padding=1, compute_dtype=None):
    """x_ncl: (N, Cin, L); w*: (Cout, Cin, K); b*: (Cout,). Returns (N, Cout, Lout).

    Biases are accepted for API parity but unused: a per-channel constant bias
    is exactly removed by InstanceNorm1d(affine=False).
    compute_dtype=jnp.bfloat16 casts the matmul operands only (f32 accumulation
    and f32 norm/sigmoid epilogue are kept)."""
    del b1, b2
    N, Cin, L = x_ncl.shape
    Cout, Cin_w, K = w1.shape
    assert Cin_w == Cin and w2.shape == (Cout, Cin, K)

    Lout = L + 2 * padding - K + 1          # stride = 1
    Lpad = _round_up(Lout, 128)             # lane-dense output
    Lp_total = Lpad + K - 1                 # padded input width seen by kernel
    KCin = K * Cin

    op_dtype = jnp.dtype(compute_dtype) if compute_dtype is not None else x_ncl.dtype
    op_bytes = jnp.dtype(op_dtype).itemsize
    out_dtype = x_ncl.dtype
    out_bytes = jnp.dtype(out_dtype).itemsize

    capacity = _vmem_capacity_bytes()
    budget = capacity // 2
    tc, Cout_pad, weights_resident, est = _pick_tiling(
        Cout, Cin, K, Lp_total, Lpad, op_bytes, out_bytes, budget)
    nj = Cout_pad // tc

    # Single pad op: conv 'same' padding fused with the lane padding to 128.
    # TODO(synk): on v5e, build this padding inside the kernel instead (saves
    # one extra HBM read/write of x done by the XLA pad op).
    xp = jnp.pad(x_ncl, ((0, 0), (0, 0),
                         (padding, padding + (Lpad - Lout)))).astype(op_dtype)

    # Fused im2col weights: row index j*2*tc + r with r < tc -> conv1 tile j,
    # r >= tc -> conv2 tile j; column index k*Cin + c matches xcol row order.
    def fold(w):
        wf = jnp.transpose(w, (0, 2, 1)).reshape(Cout, KCin)
        return jnp.pad(wf, ((0, Cout_pad - Cout), (0, 0)))

    wf = jnp.stack([fold(w1).reshape(nj, tc, KCin),
                    fold(w2).reshape(nj, tc, KCin)], axis=1)
    wf = wf.reshape(2 * Cout_pad, KCin).astype(op_dtype)

    if weights_resident:
        # Whole fused weight tensor stays VMEM-resident for the entire grid.
        w_spec = pl.BlockSpec((2 * Cout_pad, KCin), lambda n, j: (0, 0))
    else:
        w_spec = pl.BlockSpec((2 * tc, KCin), lambda n, j: (j, 0))

    vmem_limit = int(min(capacity, max(2 * est + (8 << 20), 32 << 20)))

    kernel = _make_kernel(K, Cin, Lout, tc, weights_resident)

    out = pl.pallas_call(
        kernel,
        out_shape=jax.ShapeDtypeStruct((N, Cout_pad, Lpad), out_dtype),
        grid_spec=pltpu.PrefetchScalarGridSpec(
            num_scalar_prefetch=0,
            grid=(N, nj),
            in_specs=[
                pl.BlockSpec((1, Cin, Lp_total), lambda n, j: (n, 0, 0)),
                w_spec,
            ],
            out_specs=pl.BlockSpec((1, tc, Lpad), lambda n, j: (n, j, 0)),
            scratch_shapes=[pltpu.VMEM((KCin, Lpad), op_dtype)],
        ),
        compiler_params=pltpu.CompilerParams(
            dimension_semantics=("parallel", "arbitrary"),
            vmem_limit_bytes=vmem_limit),
    )(xp, wf)

    if Cout_pad != Cout or Lpad != Lout:
        out = out[:, :Cout, :Lout]
    return out  # (N, Cout, Lout) in the original NCL layout


def reference(x, w1, b1, w2, b2, padding=1, eps=EPS):
    """Plain-JAX reference matching PyTorch GatedConv1d semantics (with bias)."""
    def conv(x, w, b):
        N, Cin, L = x.shape
        Cout, _, K = w.shape
        xp = jnp.pad(x, ((0, 0), (0, 0), (padding, padding)))
        Lout = L + 2 * padding - K + 1
        y = jnp.zeros((N, Cout, Lout), jnp.float32)
        for k in range(K):
            y = y + jnp.einsum('ncl,oc->nol', xp[:, :, k:k + Lout], w[:, :, k])
        return y + b[None, :, None]

    def inorm(y):
        m = y.mean(axis=-1, keepdims=True)
        v = ((y - m) ** 2).mean(axis=-1, keepdims=True)
        return (y - m) / jnp.sqrt(v + eps)

    y1 = inorm(conv(x, w1, b1))
    y2 = inorm(conv(x, w2, b2))
    return y1 * jax.nn.sigmoid(y2)


if __name__ == "__main__":
    N, Cin, Cout, L, K = 2, 4, 8, 16, 3

    key = jax.random.PRNGKey(0)
    kx, kw1, kb1, kw2, kb2 = jax.random.split(key, 5)

    x = jax.random.normal(kx, (N, Cin, L), jnp.float32)

    # nn.Conv1d default init: U(-1/sqrt(Cin*K), +1/sqrt(Cin*K)).
    bound = 1.0 / math.sqrt(Cin * K)
    w1 = jax.random.uniform(kw1, (Cout, Cin, K), jnp.float32, -bound, bound)
    b1 = jax.random.uniform(kb1, (Cout,), jnp.float32, -bound, bound)
    w2 = jax.random.uniform(kw2, (Cout, Cin, K), jnp.float32, -bound, bound)
    b2 = jax.random.uniform(kb2, (Cout,), jnp.float32, -bound, bound)

    out = gated_conv1d(x, w1, b1, w2, b2)
    jax.block_until_ready(out)

    ref = reference(x, w1, b1, w2, b2)
    assert out.shape == (N, Cout, L)
    assert jnp.allclose(out, ref, atol=1e-4, rtol=1e-4)

    print("KERNEL_OK")
</pallas_src>

<mosaic_0001>
module attributes {stable_mosaic.version = 11 : i64} {
  func.func @kernel(%arg0: i32, %arg1: i32, %arg2: memref<1x4x130xf32, #tpu.memory_space<vmem>>, %arg3: memref<16x12xf32, #tpu.memory_space<vmem>>, %arg4: memref<1x8x128xf32, #tpu.memory_space<vmem>>, %arg5: memref<12x128xf32, #tpu.memory_space<vmem>>) attributes {dimension_semantics = [#tpu.dimension_semantics<parallel>, #tpu.dimension_semantics<arbitrary>], iteration_bounds = array<i64: 2, 1>, scalar_prefetch = 0 : i64, scratch_operands = 1 : i64, tpu.core_type = #tpu.core_type<tc>, window_params = [{transform_indices = @transform_0, window_bounds = array<i64: 1, 4, 130>}, {pipeline_mode = #tpu.pipeline_mode<synchronous>, transform_indices = @transform_1, window_bounds = array<i64: 16, 12>}, {transform_indices = @transform_2, window_bounds = array<i64: 1, 8, 128>}]} {
    %c0_i32 = arith.constant 0 : i32
    %0 = arith.cmpi eq, %arg1, %c0_i32 : i32
    %1 = arith.extui %0 : i1 to i32
    %c0_i32_0 = arith.constant 0 : i32
    %2 = arith.cmpi ne, %1, %c0_i32_0 : i32
    scf.if %2 {
      %c0_18 = arith.constant 0 : index
      %c0_19 = arith.constant 0 : index
      %c0_20 = arith.constant 0 : index
      %65 = vector.load %arg2[%c0_18, %c0_19, %c0_20] : memref<1x4x130xf32, #tpu.memory_space<vmem>>, vector<1x4x130xf32>
      %66 = vector.shape_cast %65 : vector<1x4x130xf32> to vector<4x130xf32>
      %67 = vector.extract_strided_slice %66 {offsets = [0, 0], sizes = [4, 128], strides = [1, 1]} : vector<4x130xf32> to vector<4x128xf32>
      %c0_21 = arith.constant 0 : index
      %c0_22 = arith.constant 0 : index
      %68 = vector.load %arg5[%c0_21, %c0_22] : memref<12x128xf32, #tpu.memory_space<vmem>>, vector<4x128xf32>
      tpu.vector_store %arg5[%c0_21, %c0_22], %67 {strides = array<i32>} : memref<12x128xf32, #tpu.memory_space<vmem>>, vector<4x128xf32>,
      %69 = vector.extract_strided_slice %66 {offsets = [0, 1], sizes = [4, 128], strides = [1, 1]} : vector<4x130xf32> to vector<4x128xf32>
      %c4 = arith.constant 4 : index
      %c0_23 = arith.constant 0 : index
      %70 = vector.load %arg5[%c4, %c0_23] : memref<12x128xf32, #tpu.memory_space<vmem>>, vector<4x128xf32>
      tpu.vector_store %arg5[%c4, %c0_23], %69 {strides = array<i32>} : memref<12x128xf32, #tpu.memory_space<vmem>>, vector<4x128xf32>,
      %71 = vector.extract_strided_slice %66 {offsets = [0, 2], sizes = [4, 128], strides = [1, 1]} : vector<4x130xf32> to vector<4x128xf32>
      %c8 = arith.constant 8 : index
      %c0_24 = arith.constant 0 : index
      %72 = vector.load %arg5[%c8, %c0_24] : memref<12x128xf32, #tpu.memory_space<vmem>>, vector<4x128xf32>
      tpu.vector_store %arg5[%c8, %c0_24], %71 {strides = array<i32>} : memref<12x128xf32, #tpu.memory_space<vmem>>, vector<4x128xf32>,
    } else {
    }
    %c16_i32 = arith.constant 16 : i32
    %3 = arith.muli %arg1, %c16_i32 : i32
    %4 = tpu.assume_multiple %3, 16 : i32
    %5 = arith.index_cast %4 : i32 to index
    %c0 = arith.constant 0 : index
    %6 = vector.load %arg3[%5, %c0] : memref<16x12xf32, #tpu.memory_space<vmem>>, vector<16x12xf32>
    %c0_1 = arith.constant 0 : index
    %c0_2 = arith.constant 0 : index
    %7 = vector.load %arg5[%c0_1, %c0_2] : memref<12x128xf32, #tpu.memory_space<vmem>>, vector<12x128xf32>
    %cst = arith.constant dense<0.000000e+00> : vector<16x128xf32>
    %8 = tpu.matmul %6, %7, %cst {dimension_numbers = #tpu.dot_dimension_numbers<[1], [0], [0], [1], [0, 0, 1, 1], [], []>} : vector<16x12xf32>, vector<12x128xf32>, vector<16x128xf32> -> vector<16x128xf32>
    %9 = vector.extract_strided_slice %8 {offsets = [0, 0], sizes = [8, 128], strides = [1, 1]} : vector<16x128xf32> to vector<8x128xf32>
    %10 = vector.extract_strided_slice %8 {offsets = [8, 0], sizes = [8, 128], strides = [1, 1]} : vector<16x128xf32> to vector<8x128xf32>
    %11 = tpu.iota {dimensions = array<i32: 1>} : vector<1x128xi32>
    %c16_i32_3 = arith.constant 16 : i32
    %12 = vector.broadcast %c16_i32_3 : i32 to vector<1x128xi32>
    %13 = arith.cmpi slt, %11, %12 : vector<1x128xi32>
    %14 = arith.extui %13 : vector<1x128xi1> to vector<1x128xi32>
    %15 = arith.sitofp %14 : vector<1x128xi32> to vector<1x128xf32>
    %16 = vector.broadcast %15 : vector<1x128xf32> to vector<8x128xf32>
    %17 = arith.mulf %9, %16 : vector<8x128xf32>
    %cst_4 = arith.constant dense<0.000000e+00> : vector<8xf32>
    %18 = vector.multi_reduction <add>, %17, %cst_4 [1] : vector<8x128xf32> to vector<8xf32>
    %19 = vector.shape_cast %18 : vector<8xf32> to vector<8x1xf32>
    %cst_5 = arith.constant 6.250000e-02 : f32
    %20 = vector.broadcast %cst_5 : f32 to vector<8x1xf32>
    %21 = arith.mulf %19, %20 : vector<8x1xf32>
    %22 = vector.broadcast %21 : vector<8x1xf32> to vector<8x128xf32>
    %23 = arith.subf %9, %22 : vector<8x128xf32>
    %24 = vector.broadcast %15 : vector<1x128xf32> to vector<8x128xf32>
    %25 = arith.mulf %23, %24 : vector<8x128xf32>
    %26 = arith.mulf %25, %25 : vector<8x128xf32>
    %cst_6 = arith.constant dense<0.000000e+00> : vector<8xf32>
    %27 = vector.multi_reduction <add>, %26, %cst_6 [1] : vector<8x128xf32> to vector<8xf32>
    %28 = vector.shape_cast %27 : vector<8xf32> to vector<8x1xf32>
    %cst_7 = arith.constant 6.250000e-02 : f32
    %29 = vector.broadcast %cst_7 : f32 to vector<8x1xf32>
    %30 = arith.mulf %28, %29 : vector<8x1xf32>
    %cst_8 = arith.constant 9.99999974E-6 : f32
    %31 = vector.broadcast %cst_8 : f32 to vector<8x1xf32>
    %32 = arith.addf %30, %31 : vector<8x1xf32>
    %33 = math.rsqrt %32 : vector<8x1xf32>
    %34 = vector.broadcast %33 : vector<8x1xf32> to vector<8x128xf32>
    %35 = arith.mulf %23, %34 : vector<8x128xf32>
    %36 = vector.broadcast %15 : vector<1x128xf32> to vector<8x128xf32>
    %37 = arith.mulf %10, %36 : vector<8x128xf32>
    %cst_9 = arith.constant dense<0.000000e+00> : vector<8xf32>
    %38 = vector.multi_reduction <add>, %37, %cst_9 [1] : vector<8x128xf32> to vector<8xf32>
    %39 = vector.shape_cast %38 : vector<8xf32> to vector<8x1xf32>
    %cst_10 = arith.constant 6.250000e-02 : f32
    %40 = vector.broadcast %cst_10 : f32 to vector<8x1xf32>
    %41 = arith.mulf %39, %40 : vector<8x1xf32>
    %42 = vector.broadcast %41 : vector<8x1xf32> to vector<8x128xf32>
    %43 = arith.subf %10, %42 : vector<8x128xf32>
    %44 = vector.broadcast %15 : vector<1x128xf32> to vector<8x128xf32>
    %45 = arith.mulf %43, %44 : vector<8x128xf32>
    %46 = arith.mulf %45, %45 : vector<8x128xf32>
    %cst_11 = arith.constant dense<0.000000e+00> : vector<8xf32>
    %47 = vector.multi_reduction <add>, %46, %cst_11 [1] : vector<8x128xf32> to vector<8xf32>
    %48 = vector.shape_cast %47 : vector<8xf32> to vector<8x1xf32>
    %cst_12 = arith.constant 6.250000e-02 : f32
    %49 = vector.broadcast %cst_12 : f32 to vector<8x1xf32>
    %50 = arith.mulf %48, %49 : vector<8x1xf32>
    %cst_13 = arith.constant 9.99999974E-6 : f32
    %51 = vector.broadcast %cst_13 : f32 to vector<8x1xf32>
    %52 = arith.addf %50, %51 : vector<8x1xf32>
    %53 = math.rsqrt %52 : vector<8x1xf32>
    %54 = vector.broadcast %53 : vector<8x1xf32> to vector<8x128xf32>
    %55 = arith.mulf %43, %54 : vector<8x128xf32>
    %56 = arith.negf %55 : vector<8x128xf32>
    %57 = math.exp %56 : vector<8x128xf32>
    %cst_14 = arith.constant 1.000000e+00 : f32
    %58 = vector.broadcast %cst_14 : f32 to vector<8x128xf32>
    %59 = arith.addf %58, %57 : vector<8x128xf32>
    %60 = arith.divf %58, %59 : vector<8x128xf32>
    %61 = arith.mulf %35, %60 : vector<8x128xf32>
    %c0_15 = arith.constant 0 : index
    %c0_16 = arith.constant 0 : index
    %c0_17 = arith.constant 0 : index
    %62 = vector.load %arg4[%c0_15, %c0_16, %c0_17] : memref<1x8x128xf32, #tpu.memory_space<vmem>>, vector<1x8x128xf32>
    %63 = vector.shape_cast %62 : vector<1x8x128xf32> to vector<8x128xf32>
    %64 = vector.shape_cast %61 : vector<8x128xf32> to vector<1x8x128xf32>
    tpu.vector_store %arg4[%c0_15, %c0_16, %c0_17], %64 {strides = array<i32>} : memref<1x8x128xf32, #tpu.memory_space<vmem>>, vector<1x8x128xf32>,
    return
  }
  func.func @transform_0(%arg0: i32, %arg1: i32) -> (i32, i32, i32) {
    %c0_i32 = arith.constant 0 : i32
    %c0_i32_0 = arith.constant 0 : i32
    %c0_i32_1 = arith.constant 0 : i32
    return %arg0, %c0_i32, %c0_i32_0 : i32, i32, i32
  }
  func.func @transform_1(%arg0: i32, %arg1: i32) -> (i32, i32) {
    %c0_i32 = arith.constant 0 : i32
    %c0_i32_0 = arith.constant 0 : i32
    %c0_i32_1 = arith.constant 0 : i32
    return %c0_i32, %c0_i32_0 : i32, i32
  }
  func.func @transform_2(%arg0: i32, %arg1: i32) -> (i32, i32, i32) {
    %c0_i32 = arith.constant 0 : i32
    %c0_i32_0 = arith.constant 0 : i32
    return %arg0, %arg1, %c0_i32 : i32, i32, i32
  }
}

</mosaic_0001>

<bundles_post_ra>
// kernel: tpu_custom_call.1
= control target key start
LH: loop header
LB: loop body
LE: loop exit
PB: predicated region body
PF: predicated region fallthrough
CT: control target
= control target key end

     0   :  { %7 = vsyncpa [#allocation4], 0  ;;  %s967_s0 = inlined_call_operand.hbm [shape: f32[2,4,130], index: 0, kind: input, shape index: {}]   ;;  %s968_s1 = inlined_call_operand.hbm [shape: f32[16,12], index: 1, kind: input, shape index: {}]   ;;  %s969_s2 = inlined_call_operand.hbm [shape: f32[2,8,128], index: 2, kind: output, shape index: {}]  }
   0x1   :  { %9 = vsyncpa [#allocation4 + $0x1], 0 }
   0x2   :  { %10 = vsyncpa [#allocation7], 0 }
   0x3   :  { %11 = vsyncpa [#allocation5], 0 }
   0x4   :  { %13 = vsyncpa [#allocation5 + $0x1], 0  ;;  %s747_s9 = smov 0   ;;  %s749_s10 = smov 0  }
   0x5   :  { %s751_s11 = smov 0   ;;  %s753_s12 = smov 0  }
   0x6   :  { %s755_s13 = smov 0   ;;  %s757_s14 = smov 0  }
   0x7 LB: > { %s450_s15 = sadd.s32 4294967295, %s721_s14   ;;  %s451_s16 = sadd.s32 4294967294, %s721_s14   ;;  %s721_s14 = sphi %s757_s14, %s19_s14   ;;  %s717_s13 = sphi %s755_s13, %s993_s13   ;;  %s713_s12 = sphi %s753_s12, %s992_s12   ;;  %s709_s11 = sphi %s751_s11, %s991_s11   ;;  %s705_s10 = sphi %s749_s10, %s990_s10   ;;  %s701_s9 = sphi %s747_s9, %s989_s9  }
   0x8   : > { %p51_p0 = scmp.ne.s32.totalorder %s705_s10, %s701_s9  ;;  %p781_p1 = scmp.eq.s32.totalorder %s450_s15, 0 }
   0x9   : > { %p785_p2 = scmp.eq.s32.totalorder %s450_s15, 1  ;;  %p104_p3 = scmp.eq.s32.totalorder %s451_s16, 1 }
   0xa   : > { %s974_s17 = scalar_select %p781_p1, 1, 0 }
   0xb   : > { %s975_s18 = scalar_select %p785_p2, 1, 0 }
   0xc   : > { %p791_p4 = por %p781_p1, %p51_p0  ;;  %p452_p5 = scmp.ge.s32.totalorder %s721_s14, 1 }
   0xd   : > { %p796_p6 = por %p104_p3, %p51_p0  ;;  %p111_p7 = scmp.lt.s32.totalorder %s721_s14, 3 }
   0xe   : > { %s976_s19 = scalar_select %p791_p4, 1, 0 }
   0xf   : > { %s977_s20 = scalar_select %p796_p6, 1, 0 }
  0x10   : > { %p801_p8 = pnand %p452_p5, %p111_p7  ;;  %s723_s22 = smov [#allocation6]  }
  0x11   : > { %s123_s23 = sshll.u32 %s723_s22, 4  ;;  %s31_s25 = sadd.s32 1, %s717_s13  ;;  %s124_s23 = int_to_ptr.vmem [resolvable:$true] %s123_s23 }
  0x12   : > { %s978_s21 = scalar_select %p801_p8, 1, 0 }
  0x13   : > { %p497_p9 = pneg %p801_p8  ;;  %s577_s28 = scalar_lea.hbm %s968_s1, 256 }
  0x14   : > { %p578_p12 = scmp.ne.s32.totalorder %s968_s1, %s577_s28  ;;  %p584_p5 = scmp.lt.u32.totalorder %s577_s28, %s968_s1 }
  0x15   : > { %p810_p11 = pnand %p497_p9, %p781_p1 }
  0x17   : > { %p579_p13 = pneg %p810_p11 }
  0x19   : > { %p580_p0 = pnand %p579_p13, %p578_p12 }
  0x1b   : > { %p581_p3 = pneg %p580_p0 }
  0x1d   : > { %p586_p7 = pnand %p584_p5, %p581_p3 }
  0x1f   : > { %589 = shalt.err (!%p586_p7)
}
  0x20   : > { %s590_s5 = scalar_lea.vmem %s124_s23, 256  ;;  %p598_p1 = scmp.lt.s32.totalorder %s124_s23, %s124_s23 }
  0x21   : > { %p591_p9 = scmp.ne.s32.totalorder %s124_s23, %s590_s5  ;;  %p599_p4 = scmp.lt.s32.totalorder %s590_s5, %s590_s5 }
  0x23   : > { %p593_p10 = pnand %p591_p9, %p579_p13  ;;  %p600_p8 = por %p599_p4, %p598_p1 }
  0x25   : > { %p594_p6 = pneg %p593_p10 }
  0x27   : > { %p601_p2 = pnand %p600_p8, %p594_p6 }
  0x29   : > { %604 = shalt.err (!%p601_p2)
}
  0x2a   : > { %s724_s6 = smov 128   ;;  %s725_s7 = smov 8  }
  0x2b   : > { %500 = dma.hbm_to_vmem [thread:$0]  (!%p810_p11), %s968_s1, 256, %s124_s23, [#allocation7], %s724_s6, %s724_s6, %s725_s7  }
  0x2c   : > { %p33_p1 = scmp.ge.s32.totalorder %s31_s25, 2  ;;  %s38_s16 = sadd.s32 1, %s709_s11 }
  0x2d   : > { %p45_p2 = scmp.ne.s32.totalorder %s709_s11, %s705_s10  ;;  %p46_p4 = scmp.eq.s32.totalorder %s721_s14, 0 }
  0x2e   : > { %s995_s25 = smov (%p33_p1, %s31_s25), 0  ;;  %p981_p8 = scmp.ne.s32.totalorder %s975_s18, 0 }
  0x2f   : > { %p837_p6 = por %p46_p4, %p45_p2  ;;  %s35_s24 = ssub.s32 %s717_s13, %s995_s25 }
  0x30   : > { %p843_p10 = por %p981_p8, %p45_p2  ;;  %p510_p12 = scmp.lt.s32.totalorder %s721_s14, 2 }
  0x31   : > { %p36_p11 = scmp.eq.s32.totalorder %s35_s24, 0  ;;  %s137_s23 = sand.u32 1, %s709_s11  }
  0x32   : > { %s455_s27 = sshll.u32 %s137_s23, 3  ;;  %s471_s29 = sshll.u32 %s717_s13, 7 }
  0x33   : > { %s852_s28 = scalar_select %p36_p11, %s709_s11, %s38_s16  }
  0x34   : > { %s858_s4 = scalar_lea.hbm %s967_s0, %s471_s29  ;;  %s141_s18 = scalar_lea.vmem [#allocation3], %s455_s27 }
  0x35   : > { %s149_s5 = sshll.u32 %s141_s18, 4  ;;  %p864_p13 = pnand %p510_p12, %p837_p6  ;;  %s860_s5 = int_to_ptr.vmem [resolvable:$true] %s149_s5 }
  0x36   : > { %s138_s7 = scalar_lea.sflag [#allocation4], %s137_s23  ;;  %s605_s8 = scalar_lea.hbm %s858_s4, 128 }
  0x37   : > { %p606_p0 = scmp.ne.s32.totalorder %s858_s4, %s605_s8  ;;  %p607_p3 = pneg %p864_p13 }
  0x38   : > { %s610_s24 = scalar_lea.hbm %s967_s0, 256  ;;  %p611_p9 = scmp.lt.u32.totalorder %s858_s4, %s967_s0 }
  0x39   : > { %p608_p5 = pnand %p607_p3, %p606_p0  ;;  %p612_p1 = scmp.lt.u32.totalorder %s610_s24, %s605_s8 }
  0x3a   : > { %p614_p4 = scmp.lt.u32.totalorder %s605_s8, %s858_s4 }
  0x3b   : > { %p609_p7 = pneg %p608_p5  ;;  %p613_p2 = por %p612_p1, %p611_p9 }
  0x3d   : > { %p615_p6 = por %p614_p4, %p613_p2 }
  0x3f   : > { %p616_p8 = pnand %p615_p6, %p609_p7 }
  0x41   : > { %619 = shalt.err (!%p616_p8)
}
  0x42   : > { %s620_s23 = scalar_lea.vmem %s860_s5, 128  ;;  %s726_s29 = smov [#allocation3]  }
  0x43   : > { %p621_p12 = scmp.ne.s32.totalorder %s860_s5, %s620_s23  ;;  %s625_s30 = sshll.u32 %s726_s29, 4  ;;  %s626_s30 = int_to_ptr.vmem [resolvable:$false] %s625_s30 }
  0x44   : > { %s627_s3 = scalar_lea.vmem %s626_s30, 256  ;;  %p628_p5 = scmp.lt.s32.totalorder %s860_s5, %s626_s30 }
  0x45   : > { %p623_p11 = pnand %p621_p12, %p607_p3  ;;  %p629_p9 = scmp.lt.s32.totalorder %s627_s3, %s620_s23 }
  0x47   : > { %p624_p0 = pneg %p623_p11  ;;  %p630_p1 = por %p629_p9, %p628_p5 }
  0x49   : > { %p631_p2 = pnand %p630_p1, %p624_p0 }
  0x4b   : > { %634 = shalt.err (!%p631_p2)
}
  0x4c   : > { %504 = dma.hbm_to_vmem [thread:$0]  (!%p864_p13), %s858_s4, 128, %s860_s5, %s138_s7  }
  0x4d   : > { %p984_p7 = scmp.ne.s32.totalorder %s978_s21, 0 }
  0x4e   : > { %s896_s18 = sand.u32 (!%p984_p7), 1, %s705_s10   ;;  %p985_p3 = scmp.ne.s32.totalorder (!%p984_p7), %s976_s19, 0 }
  0x4f   : > { %158 = sbr.rel (%p984_p7) target bundleno = 790 (0x316), region = 28  ;;  %s459_s8 = sshll.u32 (!%p984_p7), %s896_s18, 3 }
  0x50   : > { %s161_s15 = scalar_lea.sflag (!%p984_p7), [#allocation4], %s896_s18  ;;  %s164_s16 = scalar_lea.vmem (!%p984_p7), [#allocation3], %s459_s8 }
  0x56   : > { %688 = dma.done.wait (%p985_p3), %s161_s15, 128  }
  0x57   : > { %690 = vsyncadd (%p985_p3), %s161_s15, 4294967168  ;;  %p986_p13 = scmp.ne.s32.totalorder %s974_s17, 0 }
  0x59   : > { %692 = dma.done.wait (%p986_p13), [#allocation7], 256  }
  0x5a   : > { %694 = vsyncadd (%p986_p13), [#allocation7], 4294967040  ;;  %v193_v0 = vld [vmem:[%s164_s16] sm:$0xff]  ;;  %s727_s21 = smov 126   ;;  %s728_s4 = smov 127   ;;  %v215_v2 = vld [vmem:[#allocation6] sm:$0xff]  ;;  %v305_v13 = vlaneseq }
  0x5b   : > { %205 = vrot.lane.b32.xlu1 %v193_v0, %s727_s21  ;;  %194 = vst [vmem:[#allocation2] sm:$0xf] %v193_v0  ;;  %197 = vrot.lane.b32.xlu0 %v193_v0, %s728_s4  ;;  %v196_v1 = vcombine.high %v193_v0, %v193_v0  ;;  %vm219_vm0 = vcmask 97280   ;;  %vm209_vm1 = vcmask 1031168   ;;  %vm201_vm2 = vcmask 1039360   ;;  %v216_v12 = vld [vmem:[#allocation6 + $0x8] sm:$0xff] }
  0x5c   : > { %480 = vmatprep.mubr.msk.f32.mxu0 %vm219_vm0, %v215_v2  ;;  %vm226_vm3 = vcmask 1043456   ;;  %vm729_vm4 = vmmov 1   ;;  %v306_v14 = vand.u32 127, %v305_v13  ;;  %v730_v15 = vmov 0.0   ;;  %s468_s17 = sshll.u32 %s713_s12, 7  ;;  %s188_s19 = scalar_lea.vmem [#allocation8], %s459_s8 }
  0x5d   : > { %vm484_vm5 = vmpackc.low %vm226_vm3, %vm729_vm4  ;;  %s359_s5 = sshll.u32 %s188_s19, 4  ;;  %s918_s24 = scalar_lea.hbm %s969_s2, %s468_s17  ;;  %s920_s5 = int_to_ptr.vmem [resolvable:$true] %s359_s5 }
  0x5e   : > { %vm307_vm6 = vcmp.lt.s32.totalorder %v306_v14, 16  ;;  %s345_s22 = scalar_lea.sflag [#allocation5], %s896_s18  ;;  %s635_s27 = scalar_lea.vmem %s920_s5, 128 }
  0x5f   : > { %207 = vrot.lane.b32.xlu1 %v196_v1, %s727_s21  ;;  %199 = vrot.lane.b32.xlu0 %v196_v1, %s728_s4  ;;  %v465_v16 = vsel %vm307_vm6, 1.0, %v730_v15  ;;  %p636_p4 = scmp.ne.s32.totalorder %s920_s5, %s635_s27  ;;  %s731_s12 = smov [#allocation8]  }
  0x60   : > { %s639_s23 = sshll.u32 %s731_s12, 4  ;;  %s640_s23 = int_to_ptr.vmem [resolvable:$false] %s639_s23 }
  0x61   : > { %p637_p6 = pnand %p636_p4, %p843_p10  ;;  %s641_s29 = scalar_lea.vmem %s640_s23, 256 }
  0x62   : > { %p642_p12 = scmp.lt.s32.totalorder %s920_s5, %s640_s23  ;;  %p643_p11 = scmp.lt.s32.totalorder %s641_s29, %s635_s27 }
  0x63   : > { %p638_p8 = pneg %p637_p6 }
  0x64   : > { %p644_p0 = por %p643_p11, %p642_p12 }
  0x66   : > { %p645_p5 = pnand %p644_p0, %p638_p8 }
  0xcd   : > { %v206_v3 = vpop.permute.xlu1 %205  ;;  %v198_v4 = vpop.permute.xlu0 %197 }
  0xd1   : > { %v208_v5 = vpop.permute.xlu1 %207  ;;  %v200_v6 = vpop.permute.xlu0 %199 }
  0xd2   : > { %v210_v7 = vsel %vm209_vm1, %v206_v3, %v208_v5  ;;  %v202_v8 = vsel %vm201_vm2, %v198_v4, %v200_v6 }
  0xd3   : > { %212 = vst [vmem:[#allocation2 + $0x8] sm:$0xf] %v210_v7  ;;  %204 = vst [vmem:[#allocation2 + $0x4] sm:$0xf] %v202_v8 }
  0xda   : > { %v217_v9 = vld [vmem:[#allocation2] sm:$0xff]  ;;  %v218_v10 = vld [vmem:[#allocation2 + $0x8] sm:$0xf] }
  0xdb   : > { %v483_v11 = vpack.c.bf16 %v218_v10, %v217_v9 }
  0xdd   : > { %485 = vmatprep.subr.msk.bf16.mxu0 %vm484_vm5, %v483_v11 }
  0xde   : > { %488 = vmatpush3.bf16.msk.msra.mxu0 %vm484_vm5, %v483_v11 }
  0xe1   : > { %481 = vmatmul.mubr.msk.f32.vlgmr.msra.gmra.mrb[0].mxu0 %vm219_vm0, %v216_v12 }
 0x1b4   : > { %v482_v17 = vpop.f32.mrb[0].mxu0 }
 0x1b5   : > { %v296_v18 = vpop.f32.mrb[1].mxu0  ;;  %v323_v19 = vmul.f32 %v482_v17, %v465_v16 }
 0x1b6   : > { %v310_v20 = vmul.f32 %v465_v16, %v296_v18 }
 0x1b7   : > { %324 = vadd.xlane.f32.xlu0 %v323_v19 }
 0x1b8   : > { %311 = vadd.xlane.f32.xlu1 %v310_v20 }
 0x244   : > { %v325_v21 = vpop.xlane.xlu0 %324 }
 0x245   : > { %v326_v22 = vmul.f32 0.0625, %v325_v21  ;;  %v312_v23 = vpop.xlane.xlu1 %311 }
 0x246   : > { %v313_v24 = vmul.f32 0.0625, %v312_v23 }
 0x247   : > { %v327_v25 = vsub.f32 %v482_v17, %v326_v22 }
 0x248   : > { %v314_v26 = vsub.f32 %v296_v18, %v313_v24 }
 0x249   : > { %v328_v27 = vmul.f32 %v465_v16, %v327_v25 }
 0x24a   : > { %v315_v29 = vmul.f32 %v465_v16, %v314_v26 }
 0x24b   : > { %v329_v28 = vmul.f32 %v328_v27, %v328_v27 }
 0x24c   : > { %v316_v30 = vmul.f32 %v315_v29, %v315_v29 }
 0x24d   : > { %330 = vadd.xlane.f32.xlu0 %v329_v28 }
 0x251   : > { %317 = vadd.xlane.f32.xlu0 %v316_v30 }
 0x2da   : > { %v331_v31 = vpop.xlane.xlu0 %330 }
 0x2db   : > { %v332_v32 = vmul.f32 0.0625, %v331_v31 }
 0x2dd   : > { %v333_v33 = vadd.f32 1e-05, %v332_v32 }
 0x2de   : > { %v318_v37 = vpop.xlane.xlu0 %317 }
 0x2df   : > { %569 = vrsqrt.f32 %v333_v33  ;;  %v319_v38 = vmul.f32 0.0625, %v318_v37 }
 0x2e1   : > { %v320_v39 = vadd.f32 1e-05, %v319_v38 }
 0x2e9   : > { %v570_v34 = vpop.eup %569 }
 0x2ea   : > { %v335_v35 = vmul.f32 %v570_v34, %v327_v25 }
 0x2ec   : > { %v466_v36 = vmul.f32 -1.442695, %v335_v35 }
 0x2ee   : > { %571 = vpow2.f32 %v466_v36 }
 0x2ef   : > { %573 = vrsqrt.f32 %v320_v39 }
 0x2f8   : > { %v572_v40 = vpop.eup %571 }
 0x2f9   : > { %v339_v41 = vadd.f32 1.0, %v572_v40  ;;  %v574_v42 = vpop.eup %573 }
 0x2fa   : > { %v322_v43 = vmul.f32 %v574_v42, %v314_v26 }
 0x2fb   : > { %575 = vrcp.f32 %v339_v41 }
 0x305   : > { %v576_v44 = vpop.eup %575 }
 0x306   : > { %v342_v45 = vmul.f32 %v576_v44, %v322_v43 }
 0x308   : > { %343 = vst [vmem:[%s188_s19] sm:$0xff] %v342_v45 }
 0x309   : > { %648 = shalt.err (!%p645_p5)
}
 0x30a   : > { %s649_s30 = scalar_lea.hbm %s918_s24, 128  ;;  %s653_s8 = scalar_lea.hbm %s969_s2, 256 }
 0x30b   : > { %p650_p9 = scmp.ne.s32.totalorder %s918_s24, %s649_s30  ;;  %p654_p7 = scmp.lt.u32.totalorder %s918_s24, %s969_s2 }
 0x30c   : > { %p655_p3 = scmp.lt.u32.totalorder %s653_s8, %s649_s30  ;;  %p657_p4 = scmp.lt.u32.totalorder %s649_s30, %s918_s24 }
 0x30d   : > { %p651_p1 = pnand %p650_p9, %p843_p10 }
 0x30e   : > { %p656_p13 = por %p655_p3, %p654_p7 }
 0x30f   : > { %p652_p2 = pneg %p651_p1 }
 0x310   : > { %p658_p6 = por %p657_p4, %p656_p13 }
 0x312   : > { %p659_p8 = pnand %p658_p6, %p652_p2 }
 0x314   : > { %662 = shalt.err (!%p659_p8)
}
 0x315   : > { %495 = dma.vmem_to_hbm [thread:$0]  (%p843_p10), %s920_s5, 128, %s918_s24, %s345_s22  }
 0x316 PF: > { %s371_s21 = sand.u32 1, %s701_s9   ;;  %p987_p12 = scmp.ne.s32.totalorder %s977_s20, 0 }
 0x317   : > { %p988_p11 = scmp.ge.s32.totalorder %s721_s14, 2  ;;  %s372_s4 = scalar_lea.sflag [#allocation5], %s371_s21 }
 0x319   : > { %p506_p0 = pnand %p988_p11, %p987_p12 }
 0x31b   : > { %696 = dma.done.wait (!%p506_p0), %s372_s4, 128  }
 0x31c   : > { %698 = vsyncadd (!%p506_p0), %s372_s4, 4294967168  ;;  %s19_s14 = sadd.s32 1, %s721_s14   ;;  %s989_s9 = smov %s705_s10 }
 0x31d   : > { %p16_p5 = scmp.ge.s32.totalorder %s19_s14, 4   ;;  %s990_s10 = smov %s709_s11 }
 0x31e   : > { %s991_s11 = smov %s852_s28  ;;  %s992_s12 = smov %s717_s13 }
 0x31f   : > { %s993_s13 = smov %s995_s25  ;;  %18 = sbr.rel (!%p16_p5) target bundleno = 7 (0x7), region = 82 }
 0x326   :  { %377 = vsyncpa [#allocation4], 1 }
 0x327   :  { %379 = vsyncpa [#allocation4 + $0x1], 1 }
 0x328   :  { %380 = vsyncpa [#allocation7], 1 }
 0x329   :  { %381 = vsyncpa [#allocation5], 1 }
 0x32a   :  { %383 = vsyncpa [#allocation5 + $0x1], 1 }

</bundles_post_ra>
